<compile_context>
chip_gen: v6e
topology: v6e:2x2x1
jax: 0.10.0
libtpu: 0.0.40
codegen_flags: <defaults>
</compile_context>

<pallas_src>
import math

import jax
import jax.numpy as jnp
from jax import lax
from jax.experimental import pallas as pl
from jax.experimental.pallas import tpu as pltpu


_MATMUL_DTYPE = jnp.bfloat16   # MXU-native on v5e/v6e/v7x; accumulation stays f32
_MAX_BLOCK_B = 1024            # batch tile cap for large (t-batched) workloads
_SPLIT_THRESHOLD = 512         # above this, force >=2 grid steps (v7x megacore)


# ----------------------------------------------------------------------------
# Pallas kernels
# ----------------------------------------------------------------------------
def _rnn_update_kernel(emb_ref, td_ref, feat_ref, h_ref, w_ref, small_ref,
                       o_ref):
    """Fused RNNCell + F.normalize for one batch tile.

    emb_ref   : [b, D]      embedding part of the RNN input (the *other* entity)
    td_ref    : [b, 1]      timediffs (f32, handled on the VPU)
    feat_ref  : [b, F]      features
    h_ref     : [b, D]      previous hidden state
    w_ref     : [2D+F, D]   bf16 weight slab: rows [0:D]=emb, [D:2D]=hidden, [2D:]=feat
    small_ref : [2, D]      f32: row 0 = td weight, row 1 = fused bias (b_ih+b_hh)
    o_ref     : [b, D]      L2-normalized new hidden state
    """
    D = o_ref.shape[1]
    # MXU: bf16 operands, f32 accumulation; weight slab sliced with static offsets.
    pre = jnp.dot(emb_ref[...].astype(_MATMUL_DTYPE), w_ref[:D, :],
                  preferred_element_type=jnp.float32)
    pre = pre + jnp.dot(h_ref[...].astype(_MATMUL_DTYPE), w_ref[D:2 * D, :],
                        preferred_element_type=jnp.float32)
    pre = pre + jnp.dot(feat_ref[...].astype(_MATMUL_DTYPE), w_ref[2 * D:, :],
                        preferred_element_type=jnp.float32)
    # K=1 timediff column: VPU broadcast instead of an MXU pass; fused bias.
    pre = pre + td_ref[...] * small_ref[0:1, :] + small_ref[1:2, :]
    h_new = jnp.tanh(pre)
    # F.normalize(p=2, dim=1, eps=1e-12): v / max(||v||, eps)
    #   == v * rsqrt(max(||v||^2, eps^2))    (EUP rsqrt, no f32 divide)
    ss = jnp.sum(h_new * h_new, axis=1, keepdims=True)
    o_ref[...] = (h_new * lax.rsqrt(jnp.maximum(ss, 1e-24))).astype(o_ref.dtype)


def _project_kernel(emb_ref, td_ref, small_ref, o_ref):
    """context_convert: emb * (1 + td @ W.T + b) -- pure VPU.

    small_ref : [2, D] f32: row 0 = W.T (K=1 -> broadcast), row 1 = b + 1.
    """
    scale = td_ref[...] * small_ref[0:1, :] + small_ref[1:2, :]
    o_ref[...] = (emb_ref[...] * scale).astype(o_ref.dtype)


def _fused_interaction_kernel(user_ref, action_ref, td_ref, feat_ref,
                              w_user_ref, w_action_ref, w_feat_ref, small_ref,
                              proj_ref, user_out_ref, action_out_ref):
    """project + user_update + action_update in a single launch.

    The three MXU matmuls each produce a [b, 2D] slab whose left D columns
    feed user_update and whose right D columns feed action_update:
      w_user_ref   [D, 2D] = [user_rnn.W_hh.T   | action_rnn.W_ih.T[emb rows]]
      w_action_ref [D, 2D] = [user_rnn.W_ih.T[emb rows] | action_rnn.W_hh.T ]
      w_feat_ref   [F, 2D] = [user feat weights | action feat weights]
      small_ref    [3, 2D] f32:
        row 0 = [user td weight | action td weight]
        row 1 = [user fused bias | action fused bias]
        row 2 = [project weight  | project bias + 1 ]
    """
    D = proj_ref.shape[1]
    user = user_ref[...]
    td = td_ref[...]
    small = small_ref[...]                                        # [3, 2D] f32

    # project (VPU only): user_emb * (td * w_p + (b_p + 1))
    proj_ref[...] = (user * (td * small[2:3, :D] + small[2:3, D:])
                     ).astype(proj_ref.dtype)

    # Three merged MXU matmuls (bf16 operands, f32 accumulation).
    pre = jnp.dot(user.astype(_MATMUL_DTYPE), w_user_ref[...],
                  preferred_element_type=jnp.float32)
    pre = pre + jnp.dot(action_ref[...].astype(_MATMUL_DTYPE), w_action_ref[...],
                        preferred_element_type=jnp.float32)
    pre = pre + jnp.dot(feat_ref[...].astype(_MATMUL_DTYPE), w_feat_ref[...],
                        preferred_element_type=jnp.float32)
    pre = pre + td * small[0:1, :] + small[1:2, :]                # VPU td + bias
    h = jnp.tanh(pre)                                             # [b, 2D]

    hu = h[:, :D]                                                 # user_update half
    ha = h[:, D:]                                                 # action_update half
    ss_u = jnp.sum(hu * hu, axis=1, keepdims=True)
    ss_a = jnp.sum(ha * ha, axis=1, keepdims=True)
    user_out_ref[...] = (hu * lax.rsqrt(jnp.maximum(ss_u, 1e-24))
                         ).astype(user_out_ref.dtype)
    action_out_ref[...] = (ha * lax.rsqrt(jnp.maximum(ss_a, 1e-24))
                           ).astype(action_out_ref.dtype)


# ----------------------------------------------------------------------------
# Wrappers (batch grid, weights VMEM-resident across batch tiles)
# ----------------------------------------------------------------------------
def _batch_tile(B):
    """Tile the batch so small calls stay single-step (min fixed overhead) and
    large calls get >= 2 grid steps (v7x megacore) with tiles up to 1024."""
    if B <= _SPLIT_THRESHOLD:
        return B
    n_steps = max(2, -(-B // _MAX_BLOCK_B))
    bb = -(-B // n_steps)
    bb = ((bb + 7) // 8) * 8          # sublane-align
    return min(bb, _MAX_BLOCK_B)


def _compiler_params():
    # Batch axis is embarrassingly parallel -> shard across TCs on v7x megacore.
    # 32 MiB scoped VMEM: headroom above the v5e 16 MiB default, safe everywhere.
    return pltpu.CompilerParams(dimension_semantics=("parallel",),
                                vmem_limit_bytes=32 * 1024 * 1024)


def _rnn_update(in_emb, td, feat, h, w_slab, small, out_dtype):
    B, D = h.shape
    Fd = feat.shape[1]
    bb = _batch_tile(B)
    row = lambda d: pl.BlockSpec((bb, d), lambda i: (i, 0))
    rep = lambda a: pl.BlockSpec(a.shape, lambda i: (0, 0))
    return pl.pallas_call(
        _rnn_update_kernel,
        out_shape=jax.ShapeDtypeStruct((B, D), out_dtype),
        grid=(pl.cdiv(B, bb),),
        in_specs=[row(D), row(1), row(Fd), row(D), rep(w_slab), rep(small)],
        out_specs=row(D),
        compiler_params=_compiler_params(),
    )(in_emb, td, feat, h, w_slab, small)


def _project(emb, td, small, out_dtype):
    B, D = emb.shape
    bb = _batch_tile(B)
    row = lambda d: pl.BlockSpec((bb, d), lambda i: (i, 0))
    rep = lambda a: pl.BlockSpec(a.shape, lambda i: (0, 0))
    return pl.pallas_call(
        _project_kernel,
        out_shape=jax.ShapeDtypeStruct((B, D), out_dtype),
        grid=(pl.cdiv(B, bb),),
        in_specs=[row(D), row(1), rep(small)],
        out_specs=row(D),
        compiler_params=_compiler_params(),
    )(emb, td, small)


def mondrian_forward_interaction(params, user_embeddings, action_embeddings,
                                 timediffs, features, out_dtype=jnp.float32):
    """Single pallas_call computing (project, user_update, action_update)."""
    B, D = user_embeddings.shape
    Fd = features.shape[1]
    bb = _batch_tile(B)
    row = lambda d: pl.BlockSpec((bb, d), lambda i: (i, 0))
    rep = lambda a: pl.BlockSpec(a.shape, lambda i: (0, 0))
    args = (user_embeddings, action_embeddings, timediffs, features,
            params["fused_w_user"], params["fused_w_action"],
            params["fused_w_feat"], params["fused_small"])
    in_specs = [row(D), row(D), row(1), row(Fd)] + [rep(a) for a in args[4:]]
    out_shape = tuple(jax.ShapeDtypeStruct((B, D), out_dtype) for _ in range(3))
    out_specs = (row(D), row(D), row(D))
    return pl.pallas_call(
        _fused_interaction_kernel,
        out_shape=out_shape,
        grid=(pl.cdiv(B, bb),),
        in_specs=in_specs,
        out_specs=out_specs,
        compiler_params=_compiler_params(),
    )(*args)


# ----------------------------------------------------------------------------
# Parameter construction (deterministic, mimics torch init shapes)
# ----------------------------------------------------------------------------
def _derive_kernel_params(p, D, num_features):
    """Split / cast / fold / pack parameters once at init so kernels see
    exactly the operands they need (no per-call concat, bias add, or '+1',
    and as few replicated refs as possible)."""
    out = {}
    pieces = {}
    for name in ("user", "action"):
        w_ih = p[f"{name}_w_ih_t"]                       # [D+1+F, D] f32
        w_emb = w_ih[:D]                                 # [D, D]
        w_td = w_ih[D:D + 1]                             # [1, D]
        w_feat = w_ih[D + 1:]                            # [F, D]
        w_hh = p[f"{name}_w_hh_t"]                       # [D, D]
        b_fused = p[f"{name}_b_ih"] + p[f"{name}_b_hh"]  # [1, D]
        pieces[name] = (w_emb, w_td, w_feat, w_hh, b_fused)
        # Standalone RNN kernel: one bf16 weight slab + one small f32 slab.
        out[f"{name}_w_slab"] = jnp.concatenate(
            [w_emb, w_hh, w_feat], axis=0).astype(_MATMUL_DTYPE)    # [2D+F, D]
        out[f"{name}_small"] = jnp.concatenate([w_td, b_fused], axis=0)  # [2, D]

    u_w_emb, u_w_td, u_w_feat, u_w_hh, u_b = pieces["user"]
    a_w_emb, a_w_td, a_w_feat, a_w_hh, a_b = pieces["action"]
    proj_w = p["embed_w_t"]                              # [1, D]
    proj_b1 = p["embed_b"] + 1.0                         # fold "+1"   [1, D]

    # Fused-interaction slabs: left D columns -> user_update, right -> action_update.
    out["fused_w_user"] = jnp.concatenate(
        [u_w_hh, a_w_emb], axis=1).astype(_MATMUL_DTYPE)             # [D, 2D]
    out["fused_w_action"] = jnp.concatenate(
        [u_w_emb, a_w_hh], axis=1).astype(_MATMUL_DTYPE)             # [D, 2D]
    out["fused_w_feat"] = jnp.concatenate(
        [u_w_feat, a_w_feat], axis=1).astype(_MATMUL_DTYPE)          # [F, 2D]
    out["fused_small"] = jnp.concatenate(
        [jnp.concatenate([u_w_td, a_w_td], axis=1),
         jnp.concatenate([u_b, a_b], axis=1),
         jnp.concatenate([proj_w, proj_b1], axis=1)], axis=0)        # [3, 2D]
    # Standalone project slab.
    out["proj_small"] = jnp.concatenate([proj_w, proj_b1], axis=0)   # [2, D]
    return out


def init_mondrian_params(key, embedding_dim, num_users, num_actions, num_features):
    D = embedding_dim
    rnn_in = D + 1 + num_features
    ks = jax.random.split(key, 12)
    stdv_rnn = 1.0 / math.sqrt(D)

    def uni(k, shape, s):
        return jax.random.uniform(k, shape, jnp.float32, minval=-s, maxval=s)

    params = {
        # f32 masters (torch nn.RNNCell layout, stored transposed for x @ W_t).
        "user_w_ih_t": uni(ks[0], (rnn_in, D), stdv_rnn),
        "user_w_hh_t": uni(ks[1], (D, D), stdv_rnn),
        "user_b_ih": uni(ks[2], (1, D), stdv_rnn),
        "user_b_hh": uni(ks[3], (1, D), stdv_rnn),
        "action_w_ih_t": uni(ks[4], (rnn_in, D), stdv_rnn),
        "action_w_hh_t": uni(ks[5], (D, D), stdv_rnn),
        "action_b_ih": uni(ks[6], (1, D), stdv_rnn),
        "action_b_hh": uni(ks[7], (1, D), stdv_rnn),
        # embedding_layer = NormalLinear(1, D): normal(0, 1/sqrt(in_features=1))
        "embed_w_t": jax.random.normal(ks[8], (1, D), jnp.float32),
        "embed_b": jax.random.normal(ks[9], (1, D), jnp.float32),
        # shape-only in torch __init__, unused in forward
        "initial_user_embedding": jax.random.normal(ks[10], (D,), jnp.float32),
        "initial_action_embedding": jax.random.normal(ks[11], (D,), jnp.float32),
    }
    params.update(_derive_kernel_params(params, D, num_features))
    return params


def mondrian_forward(params, user_embeddings, action_embeddings,
                     timediffs=None, features=None, select=None,
                     out_dtype=jnp.float32):
    if select == "action_update":
        return _rnn_update(user_embeddings, timediffs, features,
                           action_embeddings, params["action_w_slab"],
                           params["action_small"], out_dtype)
    elif select == "user_update":
        return _rnn_update(action_embeddings, timediffs, features,
                           user_embeddings, params["user_w_slab"],
                           params["user_small"], out_dtype)
    elif select == "project":
        return _project(user_embeddings, timediffs, params["proj_small"],
                        out_dtype)
    else:
        raise ValueError(f"unknown select: {select}")


# ----------------------------------------------------------------------------
# Reference (pure JAX, f32) for sanity checks
# ----------------------------------------------------------------------------
def _ref_rnn_update(x, h, w_ih_t, w_hh_t, b_ih, b_hh):
    h_new = jnp.tanh(x @ w_ih_t + b_ih + h @ w_hh_t + b_hh)
    n = jnp.maximum(jnp.sqrt(jnp.sum(h_new * h_new, axis=1, keepdims=True)), 1e-12)
    return h_new / n


def _ref_project(emb, td, w_t, b):
    return emb * (1.0 + (td @ w_t + b))


# ----------------------------------------------------------------------------
if __name__ == "__main__":
    embedding_dim = 32
    num_users = 16
    num_actions = 16
    num_features = 7
    batch = 8

    key = jax.random.PRNGKey(0)
    kp, ku, ka, kt, kf = jax.random.split(key, 5)

    params = init_mondrian_params(kp, embedding_dim, num_users,
                                  num_actions, num_features)

    user_emb = jax.random.normal(ku, (batch, embedding_dim), jnp.float32)
    action_emb = jax.random.normal(ka, (batch, embedding_dim), jnp.float32)
    timediffs = jax.random.normal(kt, (batch, 1), jnp.float32)
    features = jax.random.normal(kf, (batch, num_features), jnp.float32)

    out_action = mondrian_forward(params, user_emb, action_emb,
                                  timediffs, features, select="action_update")
    out_user = mondrian_forward(params, user_emb, action_emb,
                                timediffs, features, select="user_update")
    out_proj = mondrian_forward(params, user_emb, action_emb,
                                timediffs, features, select="project")
    proj_f, user_f, action_f = mondrian_forward_interaction(
        params, user_emb, action_emb, timediffs, features)

    jax.block_until_ready((out_action, out_user, out_proj,
                           proj_f, user_f, action_f))

    # pure-JAX f32 reference (kernel uses bf16 MXU operands -> loose tolerance)
    x_a = jnp.concatenate([user_emb, timediffs, features], axis=1)
    ref_a = _ref_rnn_update(x_a, action_emb, params["action_w_ih_t"],
                            params["action_w_hh_t"], params["action_b_ih"],
                            params["action_b_hh"])
    x_u = jnp.concatenate([action_emb, timediffs, features], axis=1)
    ref_u = _ref_rnn_update(x_u, user_emb, params["user_w_ih_t"],
                            params["user_w_hh_t"], params["user_b_ih"],
                            params["user_b_hh"])
    ref_p = _ref_project(user_emb, timediffs, params["embed_w_t"],
                         params["embed_b"])

    tol = dict(atol=3e-2, rtol=3e-2)
    assert jnp.allclose(out_action, ref_a, **tol)
    assert jnp.allclose(out_user, ref_u, **tol)
    assert jnp.allclose(out_proj, ref_p, atol=1e-5, rtol=1e-5)   # pure f32 path
    assert jnp.allclose(action_f, ref_a, **tol)
    assert jnp.allclose(user_f, ref_u, **tol)
    assert jnp.allclose(proj_f, ref_p, atol=1e-5, rtol=1e-5)

    print("KERNEL_OK")
</pallas_src>

<mosaic_0001>
module attributes {stable_mosaic.version = 11 : i64} {
  func.func @_rnn_update_kernel(%arg0: i32, %arg1: memref<8x32xf32, #tpu.memory_space<vmem>>, %arg2: memref<8x1xf32, #tpu.memory_space<vmem>>, %arg3: memref<8x7xf32, #tpu.memory_space<vmem>>, %arg4: memref<8x32xf32, #tpu.memory_space<vmem>>, %arg5: memref<71x32xbf16, #tpu.memory_space<vmem>>, %arg6: memref<2x32xf32, #tpu.memory_space<vmem>>, %arg7: memref<8x32xf32, #tpu.memory_space<vmem>>) attributes {dimension_semantics = [#tpu.dimension_semantics<parallel>], iteration_bounds = array<i64: 1>, scalar_prefetch = 0 : i64, scratch_operands = 0 : i64, tpu.core_type = #tpu.core_type<tc>, window_params = [{transform_indices = @transform_0, window_bounds = array<i64: 8, 32>}, {transform_indices = @transform_1, window_bounds = array<i64: 8, 1>}, {transform_indices = @transform_2, window_bounds = array<i64: 8, 7>}, {transform_indices = @transform_3, window_bounds = array<i64: 8, 32>}, {pipeline_mode = #tpu.pipeline_mode<synchronous>, transform_indices = @transform_4, window_bounds = array<i64: 71, 32>}, {pipeline_mode = #tpu.pipeline_mode<synchronous>, transform_indices = @transform_5, window_bounds = array<i64: 2, 32>}, {transform_indices = @transform_6, window_bounds = array<i64: 8, 32>}]} {
    %c0 = arith.constant 0 : index
    %c0_0 = arith.constant 0 : index
    %0 = vector.load %arg1[%c0, %c0_0] : memref<8x32xf32, #tpu.memory_space<vmem>>, vector<8x32xf32>
    %1 = arith.truncf %0 : vector<8x32xf32> to vector<8x32xbf16>
    %c0_1 = arith.constant 0 : index
    %c0_2 = arith.constant 0 : index
    %2 = vector.load %arg5[%c0_1, %c0_2] : memref<71x32xbf16, #tpu.memory_space<vmem>>, vector<32x32xbf16>
    %cst = arith.constant dense<0.000000e+00> : vector<8x32xf32>
    %3 = tpu.matmul %1, %2, %cst {dimension_numbers = #tpu.dot_dimension_numbers<[1], [0], [0], [1], [0, 0, 1, 1], [], []>} : vector<8x32xbf16>, vector<32x32xbf16>, vector<8x32xf32> -> vector<8x32xf32>
    %c0_3 = arith.constant 0 : index
    %c0_4 = arith.constant 0 : index
    %4 = vector.load %arg4[%c0_3, %c0_4] : memref<8x32xf32, #tpu.memory_space<vmem>>, vector<8x32xf32>
    %5 = arith.truncf %4 : vector<8x32xf32> to vector<8x32xbf16>
    %c32 = arith.constant 32 : index
    %c0_5 = arith.constant 0 : index
    %6 = vector.load %arg5[%c32, %c0_5] : memref<71x32xbf16, #tpu.memory_space<vmem>>, vector<32x32xbf16>
    %cst_6 = arith.constant dense<0.000000e+00> : vector<8x32xf32>
    %7 = tpu.matmul %5, %6, %cst_6 {dimension_numbers = #tpu.dot_dimension_numbers<[1], [0], [0], [1], [0, 0, 1, 1], [], []>} : vector<8x32xbf16>, vector<32x32xbf16>, vector<8x32xf32> -> vector<8x32xf32>
    %8 = arith.addf %3, %7 : vector<8x32xf32>
    %c0_7 = arith.constant 0 : index
    %c0_8 = arith.constant 0 : index
    %9 = vector.load %arg3[%c0_7, %c0_8] : memref<8x7xf32, #tpu.memory_space<vmem>>, vector<8x7xf32>
    %10 = arith.truncf %9 : vector<8x7xf32> to vector<8x7xbf16>
    %c64 = arith.constant 64 : index
    %c0_9 = arith.constant 0 : index
    %11 = vector.load %arg5[%c64, %c0_9] : memref<71x32xbf16, #tpu.memory_space<vmem>>, vector<7x32xbf16>
    %cst_10 = arith.constant dense<0.000000e+00> : vector<8x32xf32>
    %12 = tpu.matmul %10, %11, %cst_10 {dimension_numbers = #tpu.dot_dimension_numbers<[1], [0], [0], [1], [0, 0, 1, 1], [], []>} : vector<8x7xbf16>, vector<7x32xbf16>, vector<8x32xf32> -> vector<8x32xf32>
    %13 = arith.addf %8, %12 : vector<8x32xf32>
    %c0_11 = arith.constant 0 : index
    %c0_12 = arith.constant 0 : index
    %14 = vector.load %arg2[%c0_11, %c0_12] : memref<8x1xf32, #tpu.memory_space<vmem>>, vector<8x1xf32>
    %c0_13 = arith.constant 0 : index
    %c0_14 = arith.constant 0 : index
    %15 = vector.load %arg6[%c0_13, %c0_14] : memref<2x32xf32, #tpu.memory_space<vmem>>, vector<1x32xf32>
    %16 = vector.broadcast %14 : vector<8x1xf32> to vector<8x32xf32>
    %17 = vector.broadcast %15 : vector<1x32xf32> to vector<8x32xf32>
    %18 = arith.mulf %16, %17 : vector<8x32xf32>
    %19 = arith.addf %13, %18 : vector<8x32xf32>
    %c1 = arith.constant 1 : index
    %c0_15 = arith.constant 0 : index
    %20 = vector.load %arg6[%c1, %c0_15] : memref<2x32xf32, #tpu.memory_space<vmem>>, vector<1x32xf32>
    %21 = vector.broadcast %20 : vector<1x32xf32> to vector<8x32xf32>
    %22 = arith.addf %19, %21 : vector<8x32xf32>
    %23 = math.tanh %22 : vector<8x32xf32>
    %24 = arith.mulf %23, %23 : vector<8x32xf32>
    %cst_16 = arith.constant dense<0.000000e+00> : vector<8xf32>
    %25 = vector.multi_reduction <add>, %24, %cst_16 [1] : vector<8x32xf32> to vector<8xf32>
    %26 = vector.shape_cast %25 : vector<8xf32> to vector<8x1xf32>
    %cst_17 = arith.constant 1.000000e-24 : f32
    %27 = vector.broadcast %cst_17 : f32 to vector<8x1xf32>
    %28 = arith.maximumf %26, %27 : vector<8x1xf32>
    %29 = math.rsqrt %28 : vector<8x1xf32>
    %30 = vector.broadcast %29 : vector<8x1xf32> to vector<8x32xf32>
    %31 = arith.mulf %23, %30 : vector<8x32xf32>
    %c0_18 = arith.constant 0 : index
    %c0_19 = arith.constant 0 : index
    %32 = vector.load %arg7[%c0_18, %c0_19] : memref<8x32xf32, #tpu.memory_space<vmem>>, vector<8x32xf32>
    tpu.vector_store %arg7[%c0_18, %c0_19], %31 {strides = array<i32>} : memref<8x32xf32, #tpu.memory_space<vmem>>, vector<8x32xf32>,
    return
  }
  func.func @transform_0(%arg0: i32) -> (i32, i32) {
    %c0_i32 = arith.constant 0 : i32
    %c0_i32_0 = arith.constant 0 : i32
    return %arg0, %c0_i32 : i32, i32
  }
  func.func @transform_1(%arg0: i32) -> (i32, i32) {
    %c0_i32 = arith.constant 0 : i32
    %c0_i32_0 = arith.constant 0 : i32
    return %arg0, %c0_i32 : i32, i32
  }
  func.func @transform_2(%arg0: i32) -> (i32, i32) {
    %c0_i32 = arith.constant 0 : i32
    %c0_i32_0 = arith.constant 0 : i32
    return %arg0, %c0_i32 : i32, i32
  }
  func.func @transform_3(%arg0: i32) -> (i32, i32) {
    %c0_i32 = arith.constant 0 : i32
    %c0_i32_0 = arith.constant 0 : i32
    return %arg0, %c0_i32 : i32, i32
  }
  func.func @transform_4(%arg0: i32) -> (i32, i32) {
    %c0_i32 = arith.constant 0 : i32
    %c0_i32_0 = arith.constant 0 : i32
    %c0_i32_1 = arith.constant 0 : i32
    return %c0_i32, %c0_i32_0 : i32, i32
  }
  func.func @transform_5(%arg0: i32) -> (i32, i32) {
    %c0_i32 = arith.constant 0 : i32
    %c0_i32_0 = arith.constant 0 : i32
    %c0_i32_1 = arith.constant 0 : i32
    return %c0_i32, %c0_i32_0 : i32, i32
  }
  func.func @transform_6(%arg0: i32) -> (i32, i32) {
    %c0_i32 = arith.constant 0 : i32
    %c0_i32_0 = arith.constant 0 : i32
    return %arg0, %c0_i32 : i32, i32
  }
}

</mosaic_0001>

<bundles_post_ra>
// kernel: tpu_custom_call.1
= control target key start
LH: loop header
LB: loop body
LE: loop exit
PB: predicated region body
PF: predicated region fallthrough
CT: control target
= control target key end

     0   :  { %v320_v1 = vmov 0.0   ;;  %vm321_vm0 = vmmov 0   ;;  %vm155_vm1 = vcmask 1042432   ;;  %vm156_vm2 = vcmask 1043456   ;;  %s403_s0 = inlined_call_operand.vmem [shape: f32[8,32], index: 0, kind: input, shape index: {}]   ;;  %s404_s1 = inlined_call_operand.vmem [shape: f32[8,1], index: 1, kind: input, shape index: {}]   ;;  %s405_s2 = inlined_call_operand.vmem [shape: f32[8,7], index: 2, kind: input, shape index: {}]   ;;  %s406_s3 = inlined_call_operand.vmem [shape: f32[8,32], index: 3, kind: input, shape index: {}]   ;;  %s407_s4 = inlined_call_operand.vmem [shape: bf16[71,32], index: 4, kind: input, shape index: {}]   ;;  %s408_s5 = inlined_call_operand.vmem [shape: f32[2,32], index: 5, kind: input, shape index: {}]   ;;  %s409_s6 = inlined_call_operand.hbm [shape: f32[8,32], index: 6, kind: output, shape index: {}]  }
   0x1   :  { %v290_v0 = vld [vmem:[%s407_s4 + $0x18] sm:$0xff]   ;;  %262 = vmatprep.subr.bf16.mxu0 %v320_v1  ;;  %270 = vmatprep.subr.bf16.mxu1 %v320_v1  ;;  %v291_v2 = vld [vmem:[%s407_s4 + $0x8] sm:$0xff]   ;;  %v292_v3 = vld [vmem:[%s407_s4 + $0x10] sm:$0xff]   ;;  %v322_v9 = vmov 65535  }
   0x2   :  { %263 = vmatpush3.bf16.msra.mxu0 %v290_v0  ;;  %266 = vmatprep.mubr.msk.bf16.mxu0 %vm321_vm0, %v320_v1  ;;  %v293_v4 = vld [vmem:[%s407_s4] sm:$0xff]   ;;  %v157_v10 = vsel %vm155_vm1, 4294967295, %v322_v9 }
   0x3   :  { %271 = vmatpush3.bf16.msra.mxu1 %v291_v2  ;;  %264 = vmatprep.subr.bf16.mxu0 %v320_v1  ;;  %v31_v5 = vld [vmem:[%s406_s3] sm:$0xff] }
   0x4   :  { %272 = vmatprep.subr.bf16.mxu1 %v320_v1  ;;  %274 = vmatprep.mubr.msk.bf16.mxu1 %vm321_vm0, %v320_v1  ;;  %v25_v6 = vld [vmem:[%s403_s0] sm:$0xff]  ;;  %v32_v8 = vpack.c.bf16 %v31_v5, %v31_v5 }
   0x5   :  { %v150_v7 = vld [vmem:[%s407_s4 + $0x20] sm:$0xf] }
   0x6   :  { %11 = vsyncpa [#allocation3], 0  ;;  %265 = vmatpush3.bf16.msra.mxu0 %v292_v3  ;;  %vm49_vm3 = vcmask 261120   ;;  %v26_v11 = vpack.c.bf16 %v25_v6, %v25_v6  ;;  %v158_v12 = vsel %vm156_vm2, %v157_v10, 0  ;;  %v203_v13 = vld [vmem:[%s404_s1] sm:$0xff]  ;;  %v323_v15 = vmov 0  }
   0x7   :  { %273 = vmatpush3.bf16.msra.mxu1 %v293_v4  ;;  %278 = vmatprep.subr.bf16.mxu0 %v320_v1  ;;  %v160_v14 = vand.u32 %v158_v12, %v150_v7  ;;  %v148_v16 = vld [vmem:[%s405_s2] sm:$0xff]  ;;  %vm151_vm4 = vcmask 56320   ;;  %s324_s14 = smov [#allocation2]  }
   0x8   :  { %289 = vset.pattern.permute.xlu0 %v323_v15  ;;  %v149_v17 = vpack.c.bf16 %v148_v16, %v148_v16  ;;  %v252_v23 = vld [vmem:[%s408_s5] ss:$0 sm:$0xff]  ;;  %v253_v32 = vld [vmem:[%s408_s5 + $0x1] ss:$0 sm:$0xff]  ;;  %s237_s15 = sshll.u32 %s324_s14, 4  ;;  %s238_s15 = int_to_ptr.vmem [resolvable:$true] %s237_s15 }
   0x9   :  { %267 = vmatmul.mubr.msk.bf16.vlgmr.msra.gmra.mxu0 %vm49_vm3, %v32_v8  ;;  %207 = vperm.xlu0 %289, %v203_v13   ;;  %s298_s5 = scalar_lea.vmem %s238_s15, 128  ;;  %p303_p1 = scmp.lt.s32.totalorder %s238_s15, %s238_s15 }
   0xa   :  { %275 = vmatmul.mubr.msk.bf16.vlgmr.msra.gmra.mxu1 %vm49_vm3, %v26_v11  ;;  %279 = vmatpush3.bf16.msra.mxu0 %v160_v14  ;;  %p299_p0 = scmp.ne.s32.totalorder %s238_s15, %s298_s5  ;;  %p304_p2 = scmp.lt.s32.totalorder %s298_s5, %s298_s5 }
   0xb   :  { %280 = vmatprep.mubr.msk.bf16.mxu0 %vm321_vm0, %v320_v1 }
   0xc   :  { %p305_p3 = por %p304_p2, %p303_p1 }
   0xe   :  { %p306_p4 = pnand %p305_p3, %p299_p0 }
  0x11   :  { %281 = vmatmul.mubr.msk.bf16.vlgmr.msra.gmra.mxu0 %vm151_vm4, %v149_v17 }
  0x84   :  { %v208_v24 = vpop.permute.xlu0 %207 }
  0x85   :  { %v214_v29 = vmul.f32 %v252_v23, %v208_v24 }
  0xc9   :  { %v87_v18 = vpop.f32.mrf.mxu0 }
  0xca   :  { %v142_v19 = vpop.f32.mrf.mxu1 }
  0xcb   :  { %v268_v20 = vpop.f32.mrf.mxu0  ;;  %v143_v27 = vadd.f32 %v142_v19, %v87_v18 }
  0xcc   :  { %v276_v21 = vpop.f32.mrf.mxu1 }
  0xcd   :  { %v90_v22 = vpop.f32.mrf.mxu0 }
  0xce   :  { %v145_v25 = vpop.f32.mrf.mxu1 }
  0xcf   :  { %v269_v26 = vpop.f32.mrf.mxu0 }
  0xd0   :  { %v277_v28 = vpop.f32.mrf.mxu1 }
  0xd1   :  { %v196_v30 = vpop.f32.mrf.mxu0 }
  0xd2   :  { %v202_v31 = vadd.f32 %v196_v30, %v143_v27 }
  0xd3   :  { %v282_v33 = vpop.f32.mrf.mxu0 }
  0xd4   :  { %v215_v34 = vadd.f32 %v214_v29, %v202_v31 }
  0xd5   :  { %v199_v35 = vpop.f32.mrf.mxu0 }
  0xd6   :  { %v221_v36 = vadd.f32 %v253_v32, %v215_v34 }
  0xd7   :  { %v283_v37 = vpop.f32.mrf.mxu0 }
  0xd8   :  { %294 = vtanh.f32 %v221_v36 }
  0xe5   :  { %v295_v38 = vpop.eup %294 }
  0xe6   :  { %v223_v39 = vmul.f32 %v295_v38, %v295_v38 }
  0xe8   :  { %v224_v40 = vsel %vm49_vm3, %v223_v39, 0.0 }
  0xe9   :  { %225 = vadd.xlane.f32.xlu0 %v224_v40 }
 0x172   :  { %v226_v41 = vpop.xlane.xlu0 %225 }
 0x173   :  { %v227_v42 = vmax.f32 %v226_v41, 1e-24 }
 0x175   :  { %296 = vrsqrt.f32 %v227_v42 }
 0x182   :  { %v297_v43 = vpop.eup %296 }
 0x183   :  { %v229_v44 = vmul.f32 %v297_v43, %v295_v38 }
 0x185   :  { %230 = vst.msk [vmem:[#allocation2] sm:$0xff] %vm49_vm3, %v229_v44 }
 0x186   :  { %309 = shalt.err (!%p306_p4)
}
 0x187   :  { %240 = dma.vmem_to_hbm [thread:$0]  %s238_s15, 128, %s409_s6, [#allocation3]  }
 0x188   :  { %318 = dma.done.wait [#allocation3], 128  }
 0x189   :  { %319 = vsyncadd [#allocation3], 4294967168 }
 0x18a   :  { %244 = vsyncpa [#allocation3], 1 }

</bundles_post_ra>
